<compile_context>
chip_gen: v7x
topology: tpu7x:2x2x1
jax: 0.10.0
libtpu: 0.0.40
codegen_flags: <defaults>
</compile_context>

<pallas_src>
import jax
import jax.numpy as jnp
from jax.experimental import pallas as pl
from jax.experimental.pallas import tpu as pltpu

_EPS = 1e-8      # PyTorch nn.CosineSimilarity default eps
_TI_MAX = 8      # max outer-batch rows folded into one x block


def _cosine_sim_kernel(inv_temp_ref, x_ref, y_ref, o_ref):
    # x_ref: (Ti, tile_r, H)   y_ref: (tile_r, H)   o_ref: (Ti, tile_r)
    eps2 = jnp.float32(_EPS * _EPS)
    x = x_ref[...].astype(jnp.float32)
    y = y_ref[...].astype(jnp.float32)

    dot = jnp.sum(x * y, axis=-1)            # (Ti, tile_r)
    sx = jnp.sum(x * x, axis=-1)             # (Ti, tile_r)
    sy = jnp.sum(y * y, axis=-1)             # (tile_r,)

    # PyTorch clamps each norm separately: x.y / (max(|x|,eps) * max(|y|,eps)).
    # Two rsqrt's (EUP slot) also avoid f32 overflow of sx*sy.
    cos = (dot
           * jax.lax.rsqrt(jnp.maximum(sx, eps2))
           * jax.lax.rsqrt(jnp.maximum(sy, eps2)))
    # Lane-dense store: tile_r lives in the lane dimension of o_ref.
    o_ref[...] = (cos * inv_temp_ref[0]).astype(o_ref.dtype)


def _round_up(n, m):
    return ((n + m - 1) // m) * m


def _ceil_div(a, b):
    return -(-a // b)


def _sublane(itemsize):
    # (8,128) f32 tiles, (16,128) bf16, (32,128) 1-byte dtypes.
    return 8 * max(1, 4 // max(1, itemsize))


def _padded_tile_bytes(rows, cols, itemsize):
    """VMEM footprint of a (rows, cols) tile after (sublane, 128-lane) padding."""
    return (_round_up(max(rows, 1), _sublane(itemsize))
            * _round_up(max(cols, 1), 128) * itemsize)


def _vmem_budget():
    """(total input-block byte target, vmem_limit cap); defaults are v7x-safe."""
    vmem_phys = 64 << 20
    try:
        info = pltpu.get_tpu_info()
        vmem_phys = int(getattr(info, "vmem_capacity_bytes", vmem_phys)) or vmem_phys
    except Exception:
        pass
    if vmem_phys >= (100 << 20):          # v5e / v6e: 128 MiB VMEM -> bigger tiles
        return 8 << 20, 80 << 20
    return 4 << 20, 44 << 20              # v7x: 64 MiB physical / 32 MiB scoped


def _cosine_sim_3d(x3, y3, inv_temp, out_dtype):
    """x3: (bi, R, H), y3: (bj, R, H) -> (bi, bj, R) of cosine / temp.

    Grid = (ceil(bi/Ti), r_tiles, bj), j innermost: the x block (Ti batch rows)
    is DMA'd once and reused across all bj inner steps; y is re-read only
    ceil(bi/Ti) times total.
    """
    bi, n_rows, hidden = x3.shape
    bj = y3.shape[0]

    x_item = jnp.dtype(x3.dtype).itemsize
    y_item = jnp.dtype(y3.dtype).itemsize
    o_item = jnp.dtype(out_dtype).itemsize
    in_item = max(x_item, y_item)

    in_target, vmem_cap = _vmem_budget()
    lane_h = _round_up(hidden, 128)

    # Ti: shrink only if even 128-row slices would blow the budget (huge hidden).
    ti = max(1, min(bi, _TI_MAX))
    while ti > 1 and (ti + 1) * _padded_tile_bytes(min(n_rows, 128), hidden,
                                                   in_item) > in_target:
        ti -= 1

    # Row tile: largest multiple of 128 keeping (Ti+1) slices under budget; a
    # full-extent tile is always legal, so use it when it fits.
    budget_rows = max(1, in_target // ((ti + 1) * lane_h * in_item))
    if n_rows <= 128 or budget_rows >= n_rows:
        tile_r = n_rows
    else:
        tile_r = max(128, min((budget_rows // 128) * 128, (n_rows // 128) * 128))
        r_tiles = _ceil_div(n_rows, tile_r)
        # Rebalance so the tail tile is not mostly wasted compute.
        tile_r = min(tile_r, _round_up(_ceil_div(n_rows, r_tiles), 128))
    r_tiles = _ceil_div(n_rows, tile_r)

    # Honest padded accounting: double-buffered in/out blocks plus ~3 block-sized
    # f32 temporaries for the elementwise products.
    x_blk = ti * _padded_tile_bytes(tile_r, hidden, x_item)
    y_blk = _padded_tile_bytes(tile_r, hidden, y_item)
    o_blk = _padded_tile_bytes(ti, tile_r, o_item)
    temps = 3 * (ti + 1) * _padded_tile_bytes(tile_r, hidden, 4)
    vmem_need = 2 * (x_blk + y_blk + o_blk) + temps + (2 << 20)
    vmem_limit = int(min(vmem_cap, max(vmem_need, 32 << 20)))

    grid = (_ceil_div(bi, ti), r_tiles, bj)

    out5 = pl.pallas_call(
        _cosine_sim_kernel,
        out_shape=jax.ShapeDtypeStruct((bi, bj, r_tiles, 1, tile_r), out_dtype),
        grid_spec=pltpu.PrefetchScalarGridSpec(
            num_scalar_prefetch=0,
            grid=grid,
            in_specs=[
                pl.BlockSpec(memory_space=pltpu.MemorySpace.SMEM),   # 1/temp
                pl.BlockSpec((ti, tile_r, hidden), lambda i, r, j: (i, r, 0)),
                pl.BlockSpec((None, tile_r, hidden), lambda i, r, j: (j, r, 0)),
            ],
            out_specs=pl.BlockSpec(
                (ti, None, None, None, tile_r),
                lambda i, r, j: (i, j, r, 0, 0)),
        ),
        compiler_params=pltpu.CompilerParams(
            # No carried state: every output block is written exactly once, so
            # all axes are parallel (lets v7x shard across its 2 TensorCores).
            dimension_semantics=("parallel", "parallel", "parallel"),
            vmem_limit_bytes=vmem_limit,
        ),
    )(inv_temp, x3, y3)

    out = out5.reshape(bi, bj, r_tiles * tile_r)
    if r_tiles * tile_r != n_rows:
        out = out[:, :, :n_rows]          # drop partial-block tail rows
    return out


def _classify(xs, ys):
    """Split leading dims into x-only-broadcast / y-only-broadcast / shared."""
    x_only, y_only, shared = [], [], []
    for d in range(len(xs) - 1):
        a, b = xs[d], ys[d]
        if a == b:
            if a != 1:
                shared.append(d)
        elif b == 1:
            x_only.append(d)
        elif a == 1:
            y_only.append(d)
        else:
            return None
    ordered = ((not x_only or not y_only or max(x_only) < min(y_only)) and
               (not (x_only + y_only) or not shared
                or max(x_only + y_only) < min(shared)))
    return x_only, y_only, shared, ordered


def _prod(dims, shape):
    p = 1
    for d in dims:
        p *= shape[d]
    return p


def _hbm_cost(b_out, b_in):
    """Relative HBM traffic when b_out is the Ti-blocked, read-once operand."""
    ti = max(1, min(b_out, _TI_MAX))
    return b_out + _ceil_div(b_out, ti) * b_in


def similarity(x, y, temp):
    """Pallas equivalent of Similarity(temp)(x, y) = cos_sim(x, y, dim=-1) / temp."""
    x = jnp.asarray(x)
    y = jnp.asarray(y)

    out_dtype = jnp.result_type(x.dtype, y.dtype)
    if not jnp.issubdtype(out_dtype, jnp.floating):
        out_dtype = jnp.float32

    # 1/temp as a tiny SMEM operand -> sweeping the temperature never recompiles.
    inv_temp = (1.0 / jnp.asarray(temp, dtype=jnp.float32)).reshape(1)

    # Rank-align (PyTorch broadcasting).
    nd = max(x.ndim, y.ndim, 1)
    xs = (1,) * (nd - x.ndim) + tuple(x.shape)
    ys = (1,) * (nd - y.ndim) + tuple(y.shape)
    x = x.reshape(xs)
    y = y.reshape(ys)
    out_bshape = tuple(max(a, b) for a, b in zip(xs[:-1], ys[:-1]))

    if 0 in out_bshape or xs[-1] == 0 or ys[-1] == 0:
        return jnp.zeros(out_bshape, out_dtype)

    cls = _classify(xs, ys)
    if cls is None:
        raise ValueError(f"shapes {xs} and {ys} are not broadcastable")
    if not cls[3]:
        # Cosine similarity and broadcasting are symmetric: the reversed layout
        # (x=(1,B,...), y=(B,1,...)) is exactly the swapped call.
        cls_sw = _classify(ys, xs)
        if cls_sw is not None and cls_sw[3]:
            x, y, xs, ys, cls = y, x, ys, xs, cls_sw

    x_only, y_only, shared, ordered = cls
    if ordered and xs[-1] == ys[-1]:
        hidden = xs[-1]
        bi = _prod(x_only, xs)
        bj = _prod(y_only, ys)
        n_rows = _prod(shared, xs)
        x3 = x.reshape(bi, n_rows, hidden)   # pure contiguous reshapes, no copy
        y3 = y.reshape(bj, n_rows, hidden)
        if _hbm_cost(bj, bi) < _hbm_cost(bi, bj):
            # Let the cheaper-traffic operand be the Ti-blocked outer one.
            out = jnp.swapaxes(_cosine_sim_3d(y3, x3, inv_temp, out_dtype), 0, 1)
        else:
            out = _cosine_sim_3d(x3, y3, inv_temp, out_dtype)
        return out.reshape(out_bshape)

    # Fallback (interleaved broadcast dims / broadcast over the reduced dim):
    # materialize the broadcast.
    # TODO(synk): route interleaved broadcast patterns through the grid too.
    xb, yb = jnp.broadcast_arrays(x, y)
    hidden = xb.shape[-1]
    n_rows = 1
    for d in xb.shape[:-1]:
        n_rows *= d
    x3 = xb.reshape(1, n_rows, hidden)
    y3 = yb.reshape(1, n_rows, hidden)
    out = _cosine_sim_3d(x3, y3, inv_temp, out_dtype)
    return out.reshape(out_bshape)


def _reference(x, y, temp):
    """Pure-JAX reference matching torch.nn.CosineSimilarity(dim=-1)(x, y) / temp."""
    xb, yb = jnp.broadcast_arrays(jnp.asarray(x), jnp.asarray(y))
    xb = xb.astype(jnp.float32)
    yb = yb.astype(jnp.float32)
    dot = jnp.sum(xb * yb, axis=-1)
    nx = jnp.maximum(jnp.sqrt(jnp.sum(xb * xb, axis=-1)), _EPS)
    ny = jnp.maximum(jnp.sqrt(jnp.sum(yb * yb, axis=-1)), _EPS)
    return dot / (nx * ny) / temp


if __name__ == "__main__":
    key = jax.random.PRNGKey(0)
    k1, k2, k3, k4, k5, k6 = jax.random.split(key, 6)

    temp = 0.05  # temperature hyperparameter from Similarity.__init__
    batch, seq, hidden = 2, 8, 32

    # 1) Contrastive broadcasting: (B,1,S,H) x (1,B,S,H) -> (B,B,S)
    x = jax.random.normal(k1, (batch, 1, seq, hidden), dtype=jnp.float32)
    y = jax.random.normal(k2, (1, batch, seq, hidden), dtype=jnp.float32)
    out = jax.block_until_ready(similarity(x, y, temp))
    ref = _reference(x, y, temp)
    assert out.shape == (batch, batch, seq), out.shape
    assert jnp.allclose(out, ref, atol=1e-5, rtol=1e-5), (
        float(jnp.max(jnp.abs(out - ref))))

    # 2) Reversed broadcast order: (1,B,S,H) x (B,1,S,H) (handled by operand swap)
    out_r = jax.block_until_ready(similarity(y, x, temp))
    ref_r = _reference(y, x, temp)
    assert out_r.shape == (batch, batch, seq), out_r.shape
    assert jnp.allclose(out_r, ref_r, atol=1e-5, rtol=1e-5), (
        float(jnp.max(jnp.abs(out_r - ref_r))))

    # 3) Plain same-shape case (no broadcasting): (4,S,H) -> (4,S)
    a = jax.random.normal(k3, (4, seq, hidden), dtype=jnp.float32)
    b = jax.random.normal(k4, (4, seq, hidden), dtype=jnp.float32)
    out2 = jax.block_until_ready(similarity(a, b, temp))
    ref2 = _reference(a, b, temp)
    assert out2.shape == (4, seq), out2.shape
    assert jnp.allclose(out2, ref2, atol=1e-5, rtol=1e-5), (
        float(jnp.max(jnp.abs(out2 - ref2))))

    # 4) Asymmetric batches (exercises the traffic-minimizing operand swap)
    c = jax.random.normal(k5, (16, 1, 4, hidden), dtype=jnp.float32)
    d = jax.random.normal(k6, (1, 2, 4, hidden), dtype=jnp.float32)
    out3 = jax.block_until_ready(similarity(c, d, temp))
    ref3 = _reference(c, d, temp)
    assert out3.shape == (16, 2, 4), out3.shape
    assert jnp.allclose(out3, ref3, atol=1e-5, rtol=1e-5), (
        float(jnp.max(jnp.abs(out3 - ref3))))

    print("KERNEL_OK")
</pallas_src>

<mosaic_0001>
module attributes {stable_mosaic.version = 11 : i64} {
  func.func @_cosine_sim_kernel(%arg0: i32, %arg1: i32, %arg2: i32, %arg3: memref<1xf32, #tpu.memory_space<smem>>, %arg4: memref<2x8x32xf32, #tpu.memory_space<vmem>>, %arg5: memref<1x8x32xf32, #tpu.memory_space<vmem>>, %arg6: memref<2x1x1x1x8xf32, #tpu.memory_space<vmem>>) attributes {dimension_semantics = [#tpu.dimension_semantics<parallel>, #tpu.dimension_semantics<parallel>, #tpu.dimension_semantics<parallel>], iteration_bounds = array<i64: 1, 1, 2>, scalar_prefetch = 0 : i64, scratch_operands = 0 : i64, tpu.core_type = #tpu.core_type<tc>, window_params = [{transform_indices = @transform_0, window_bounds = array<i64: 1>}, {transform_indices = @transform_1, window_bounds = array<i64: 2, 8, 32>}, {transform_indices = @transform_2, window_bounds = array<i64: 1, 8, 32>}, {transform_indices = @transform_3, window_bounds = array<i64: 2, 1, 1, 1, 8>}]} {
    %c0 = arith.constant 0 : index
    %c0_0 = arith.constant 0 : index
    %c0_1 = arith.constant 0 : index
    %0 = vector.load %arg4[%c0, %c0_0, %c0_1] : memref<2x8x32xf32, #tpu.memory_space<vmem>>, vector<2x8x32xf32>
    %c0_2 = arith.constant 0 : index
    %c0_3 = arith.constant 0 : index
    %c0_4 = arith.constant 0 : index
    %1 = vector.load %arg5[%c0_2, %c0_3, %c0_4] : memref<1x8x32xf32, #tpu.memory_space<vmem>>, vector<1x8x32xf32>
    %2 = vector.shape_cast %1 : vector<1x8x32xf32> to vector<8x32xf32>
    %3 = vector.shape_cast %2 : vector<8x32xf32> to vector<1x8x32xf32>
    %4 = vector.broadcast %3 : vector<1x8x32xf32> to vector<2x8x32xf32>
    %5 = arith.mulf %0, %4 : vector<2x8x32xf32>
    %cst = arith.constant dense<0.000000e+00> : vector<2x8xf32>
    %6 = vector.multi_reduction <add>, %5, %cst [2] : vector<2x8x32xf32> to vector<2x8xf32>
    %7 = arith.mulf %0, %0 : vector<2x8x32xf32>
    %cst_5 = arith.constant dense<0.000000e+00> : vector<2x8xf32>
    %8 = vector.multi_reduction <add>, %7, %cst_5 [2] : vector<2x8x32xf32> to vector<2x8xf32>
    %9 = arith.mulf %2, %2 : vector<8x32xf32>
    %cst_6 = arith.constant dense<0.000000e+00> : vector<8xf32>
    %10 = vector.multi_reduction <add>, %9, %cst_6 [1] : vector<8x32xf32> to vector<8xf32>
    %cst_7 = arith.constant 1.000000e-16 : f32
    %11 = vector.broadcast %cst_7 : f32 to vector<2x8xf32>
    %12 = arith.maximumf %8, %11 : vector<2x8xf32>
    %13 = math.rsqrt %12 : vector<2x8xf32>
    %14 = arith.mulf %6, %13 : vector<2x8xf32>
    %cst_8 = arith.constant 1.000000e-16 : f32
    %15 = vector.broadcast %cst_8 : f32 to vector<8xf32>
    %16 = arith.maximumf %10, %15 : vector<8xf32>
    %17 = math.rsqrt %16 : vector<8xf32>
    %18 = vector.shape_cast %17 : vector<8xf32> to vector<1x8xf32>
    %19 = vector.broadcast %18 : vector<1x8xf32> to vector<2x8xf32>
    %20 = arith.mulf %14, %19 : vector<2x8xf32>
    %c0_9 = arith.constant 0 : index
    %21 = memref.load %arg3[%c0_9] : memref<1xf32, #tpu.memory_space<smem>>
    %22 = vector.broadcast %21 : f32 to vector<2x8xf32>
    %23 = arith.mulf %20, %22 : vector<2x8xf32>
    %c0_10 = arith.constant 0 : index
    %c0_11 = arith.constant 0 : index
    %c0_12 = arith.constant 0 : index
    %c0_13 = arith.constant 0 : index
    %c0_14 = arith.constant 0 : index
    %24 = vector.load %arg6[%c0_10, %c0_11, %c0_12, %c0_13, %c0_14] : memref<2x1x1x1x8xf32, #tpu.memory_space<vmem>>, vector<2x1x1x1x8xf32>
    %25 = vector.shape_cast %24 : vector<2x1x1x1x8xf32> to vector<2x8xf32>
    %26 = vector.shape_cast %23 : vector<2x8xf32> to vector<2x1x1x1x8xf32>
    tpu.vector_store %arg6[%c0_10, %c0_11, %c0_12, %c0_13, %c0_14], %26 {strides = array<i32>} : memref<2x1x1x1x8xf32, #tpu.memory_space<vmem>>, vector<2x1x1x1x8xf32>,
    return
  }
  func.func @transform_0(%arg0: i32, %arg1: i32, %arg2: i32) -> i32 {
    %c0_i32 = arith.constant 0 : i32
    %c0_i32_0 = arith.constant 0 : i32
    return %c0_i32 : i32
  }
  func.func @transform_1(%arg0: i32, %arg1: i32, %arg2: i32) -> (i32, i32, i32) {
    %c0_i32 = arith.constant 0 : i32
    %c0_i32_0 = arith.constant 0 : i32
    return %arg0, %arg1, %c0_i32 : i32, i32, i32
  }
  func.func @transform_2(%arg0: i32, %arg1: i32, %arg2: i32) -> (i32, i32, i32) {
    %c0_i32 = arith.constant 0 : i32
    %c0_i32_0 = arith.constant 0 : i32
    return %arg2, %arg1, %c0_i32 : i32, i32, i32
  }
  func.func @transform_3(%arg0: i32, %arg1: i32, %arg2: i32) -> (i32, i32, i32, i32, i32) {
    %c0_i32 = arith.constant 0 : i32
    %c0_i32_0 = arith.constant 0 : i32
    %c0_i32_1 = arith.constant 0 : i32
    return %arg0, %arg2, %arg1, %c0_i32, %c0_i32_0 : i32, i32, i32, i32, i32
  }
}

</mosaic_0001>

<bundles_post_ra>
// kernel: tpu_custom_call.1
= control target key start
LH: loop header
LB: loop body
LE: loop exit
PB: predicated region body
PF: predicated region fallthrough
CT: control target
= control target key end

     0   :  { %s915_s0 = inlined_call_operand.<no memory space> [shape: f32[1], index: 0, kind: input, shape index: {}]   ;;  %s916_s1 = inlined_call_operand.hbm [shape: f32[2,8,32], index: 1, kind: input, shape index: {}]   ;;  %s917_s2 = inlined_call_operand.hbm [shape: f32[2,8,32], index: 2, kind: input, shape index: {}]   ;;  %s918_s3 = inlined_call_operand.hbm [shape: f32[2,2,1,1,8], index: 3, kind: output, shape index: {}]  }
   0x1   :  { %8 = sst [smem:[#allocation2]] %s915_s0 }
   0x2   :  { %9 = vsyncpa [#allocation4], 0 }
   0x3   :  { %10 = vsyncpa [#allocation7], 0 }
   0x4   :  { %12 = vsyncpa [#allocation7 + $0x1], 0 }
   0x5   :  { %13 = vsyncpa [#allocation5], 0 }
   0x6   :  { %15 = vsyncpa [#allocation5 + $0x1], 0  ;;  %s693_s14 = smov 0   ;;  %s695_s15 = smov 0  }
   0x7   :  { %s697_s16 = smov 0   ;;  %s699_s17 = smov 0  }
   0x8   :  { %s701_s18 = smov 0   ;;  %s703_s19 = smov 0  }
   0x9 LB: > { %s417_s0 = sadd.s32 4294967295, %s660_s19   ;;  %s418_s20 = sadd.s32 4294967294, %s660_s19   ;;  %s660_s19 = sphi %s703_s19, %s21_s19   ;;  %s656_s18 = sphi %s701_s18, %s942_s18   ;;  %s652_s17 = sphi %s699_s17, %s941_s17   ;;  %s648_s16 = sphi %s697_s16, %s940_s16   ;;  %s644_s15 = sphi %s695_s15, %s939_s15   ;;  %s640_s14 = sphi %s693_s14, %s938_s14  }
   0xa   : > { %p111_p0 = scmp.ne.s32.totalorder %s644_s15, %s640_s14  ;;  %p727_p1 = scmp.eq.s32.totalorder %s417_s0, 0 }
   0xb   : > { %p731_p2 = scmp.eq.s32.totalorder %s417_s0, 1  ;;  %p145_p3 = scmp.eq.s32.totalorder %s418_s20, 1 }
   0xc   : > { %s923_s21 = scalar_select %p727_p1, 1, 0 }
   0xd   : > { %s924_s22 = scalar_select %p731_p2, 1, 0 }
   0xe   : > { %p737_p4 = por %p727_p1, %p111_p0  ;;  %p419_p5 = scmp.ge.s32.totalorder %s660_s19, 1 }
   0xf   : > { %p742_p6 = por %p145_p3, %p111_p0  ;;  %p152_p7 = scmp.lt.s32.totalorder %s660_s19, 3 }
  0x10   : > { %s925_s23 = scalar_select %p737_p4, 1, 0 }
  0x11   : > { %s926_s24 = scalar_select %p742_p6, 1, 0 }
  0x12   : > { %p747_p8 = pnand %p419_p5, %p152_p7  ;;  %s662_s26 = smov [#allocation3]  }
  0x13   : > { %s171_s27 = sshll.u32 %s662_s26, 4  ;;  %s33_s29 = sadd.s32 1, %s656_s18  ;;  %s172_s27 = int_to_ptr.vmem [resolvable:$true] %s171_s27 }
  0x14   : > { %s927_s25 = scalar_select %p747_p8, 1, 0 }
  0x15   : > { %p440_p9 = pneg %p747_p8  ;;  %s516_s5 = scalar_lea.hbm %s916_s1, 256 }
  0x16   : > { %p517_p12 = scmp.ne.s32.totalorder %s916_s1, %s516_s5  ;;  %p523_p5 = scmp.lt.u32.totalorder %s516_s5, %s916_s1 }
  0x17   : > { %p756_p11 = pnand %p440_p9, %p727_p1 }
  0x19   : > { %p518_p13 = pneg %p756_p11 }
  0x1b   : > { %p519_p0 = pnand %p518_p13, %p517_p12 }
  0x1d   : > { %p520_p3 = pneg %p519_p0 }
  0x1f   : > { %p525_p7 = pnand %p523_p5, %p520_p3 }
  0x21   : > { %528 = shalt.err (!%p525_p7)
}
  0x22   : > { %s529_s10 = scalar_lea.vmem %s172_s27, 256  ;;  %p537_p4 = scmp.lt.s32.totalorder %s172_s27, %s172_s27 }
  0x23   : > { %p530_p9 = scmp.ne.s32.totalorder %s172_s27, %s529_s10  ;;  %p538_p1 = scmp.lt.s32.totalorder %s529_s10, %s529_s10 }
  0x25   : > { %p532_p10 = pnand %p530_p9, %p518_p13  ;;  %p539_p8 = por %p538_p1, %p537_p4 }
  0x27   : > { %p533_p6 = pneg %p532_p10 }
  0x29   : > { %p540_p2 = pnand %p539_p8, %p533_p6 }
  0x2b   : > { %543 = shalt.err (!%p540_p2)
}
  0x2c   : > { %s663_s11 = smov 128   ;;  %s664_s12 = smov 8  }
  0x2d   : > { %443 = dma.hbm_to_vmem [thread:$0]  (!%p756_p11), %s916_s1, 256, %s172_s27, [#allocation4], %s663_s11, %s663_s11, %s664_s12  }
  0x2e   : > { %p34_p1 = scmp.ge.s32.totalorder %s33_s29, 2  ;;  %s98_s20 = sadd.s32 1, %s648_s16 }
  0x2f   : > { %p105_p2 = scmp.ne.s32.totalorder %s648_s16, %s644_s15  ;;  %p106_p4 = scmp.eq.s32.totalorder %s660_s19, 0 }
  0x30   : > { %s944_s29 = smov (%p34_p1, %s33_s29), 0  ;;  %p930_p8 = scmp.ne.s32.totalorder %s924_s22, 0 }
  0x31   : > { %p783_p6 = por %p106_p4, %p105_p2  ;;  %s93_s28 = ssub.s32 %s656_s18, %s944_s29 }
  0x32   : > { %p789_p10 = por %p930_p8, %p105_p2  ;;  %p453_p12 = scmp.lt.s32.totalorder %s660_s19, 2 }
  0x33   : > { %p96_p11 = scmp.eq.s32.totalorder %s93_s28, 0  ;;  %s185_s27 = sand.u32 1, %s648_s16  }
  0x34   : > { %s422_s4 = sshll.u32 %s185_s27, 3  ;;  %s423_s6 = sshll.u32 %s656_s18, 7 }
  0x35   : > { %s798_s5 = scalar_select %p96_p11, %s648_s16, %s98_s20  }
  0x36   : > { %s804_s9 = scalar_lea.hbm %s917_s2, %s423_s6  ;;  %s189_s22 = scalar_lea.vmem [#allocation6], %s422_s4 }
  0x37   : > { %s197_s10 = sshll.u32 %s189_s22, 4  ;;  %p810_p13 = pnand %p453_p12, %p783_p6  ;;  %s806_s10 = int_to_ptr.vmem [resolvable:$true] %s197_s10 }
  0x38   : > { %s186_s12 = scalar_lea.sflag [#allocation7], %s185_s27  ;;  %s544_s13 = scalar_lea.hbm %s804_s9, 128 }
  0x39   : > { %p545_p0 = scmp.ne.s32.totalorder %s804_s9, %s544_s13  ;;  %p546_p3 = pneg %p810_p13 }
  0x3a   : > { %s549_s28 = scalar_lea.hbm %s917_s2, 256  ;;  %p550_p9 = scmp.lt.u32.totalorder %s804_s9, %s917_s2 }
  0x3b   : > { %p547_p5 = pnand %p546_p3, %p545_p0  ;;  %p551_p1 = scmp.lt.u32.totalorder %s549_s28, %s544_s13 }
  0x3c   : > { %p553_p4 = scmp.lt.u32.totalorder %s544_s13, %s804_s9 }
  0x3d   : > { %p548_p7 = pneg %p547_p5  ;;  %p552_p2 = por %p551_p1, %p550_p9 }
  0x3f   : > { %p554_p6 = por %p553_p4, %p552_p2 }
  0x41   : > { %p555_p8 = pnand %p554_p6, %p548_p7 }
  0x43   : > { %558 = shalt.err (!%p555_p8)
}
  0x44   : > { %s559_s27 = scalar_lea.vmem %s806_s10, 128  ;;  %s665_s6 = smov [#allocation6]  }
  0x45   : > { %p560_p12 = scmp.ne.s32.totalorder %s806_s10, %s559_s27  ;;  %s564_s7 = sshll.u32 %s665_s6, 4  ;;  %s565_s7 = int_to_ptr.vmem [resolvable:$false] %s564_s7 }
  0x46   : > { %s566_s8 = scalar_lea.vmem %s565_s7, 256  ;;  %p567_p5 = scmp.lt.s32.totalorder %s806_s10, %s565_s7 }
  0x47   : > { %p562_p11 = pnand %p560_p12, %p546_p3  ;;  %p568_p9 = scmp.lt.s32.totalorder %s566_s8, %s559_s27 }
  0x49   : > { %p563_p0 = pneg %p562_p11  ;;  %p569_p1 = por %p568_p9, %p567_p5 }
  0x4b   : > { %p570_p2 = pnand %p569_p1, %p563_p0 }
  0x4d   : > { %573 = shalt.err (!%p570_p2)
}
  0x4e   : > { %447 = dma.hbm_to_vmem [thread:$0]  (!%p810_p13), %s804_s9, 128, %s806_s10, %s186_s12  }
  0x4f   : > { %p933_p7 = scmp.ne.s32.totalorder %s927_s25, 0 }
  0x50   : > { %p934_p3 = scmp.ne.s32.totalorder (!%p933_p7), %s923_s21, 0 }
  0x51   : > { %206 = sbr.rel (%p933_p7) target bundleno = 280 (0x118), region = 32 }
  0x58   : > { %627 = dma.done.wait (%p934_p3), [#allocation4], 256  }
  0x59   : > { %629 = vsyncadd (%p934_p3), [#allocation4], 4294967040  ;;  %s846_s22 = sand.u32 1, %s644_s15   ;;  %p935_p4 = scmp.ne.s32.totalorder %s925_s23, 0 }
  0x5a   : > { %s426_s13 = sshll.u32 %s846_s22, 3  ;;  %s213_s11 = scalar_lea.sflag [#allocation7], %s846_s22 }
  0x5b   : > { %s216_s0 = scalar_lea.vmem [#allocation6], %s426_s13 }
  0x5c   : > { %631 = dma.done.wait (%p935_p4), %s213_s11, 128  }
  0x5d   : > { %633 = vsyncadd (%p935_p4), %s213_s11, 4294967168  ;;  %v241_v0 = vld [vmem:[#allocation3] sm:$0xff]  ;;  %vm246_vm0 = vcmask 261120   ;;  %v243_v1 = vld [vmem:[%s216_s0] sm:$0xff]  ;;  %s275_s21 = sld [smem:[#allocation2]]  ;;  %v281_v19 = vlaneseq  ;;  %s427_s23 = sshll.u32 %s846_s22, 1 }
  0x5e   : > { %v242_v2 = vld [vmem:[#allocation3 + $0x8] sm:$0xff]  ;;  %v253_v3 = vmul.f32 %v241_v0, %v241_v0  ;;  %v261_v4 = vmul.f32 %v243_v1, %v243_v1  ;;  %v244_v6 = vmul.f32 %v243_v1, %v241_v0  ;;  %vm293_vm1 = vcmask 57344   ;;  %s429_s25 = sshll.u32 %s652_s17, 4  ;;  %s238_s9 = scalar_lea.vmem [#allocation8], %s427_s23 }
  0x5f   : > { %v254_v5 = vmul.f32 %v242_v2, %v242_v2  ;;  %v245_v11 = vmul.f32 %v243_v1, %v242_v2  ;;  %v282_v21 = vand.u32 127, %v281_v19  ;;  %v284_v22 = vshrl.u32 %v281_v19, 7  ;;  %s313_s10 = sshll.u32 %s238_s9, 4  ;;  %s864_s28 = scalar_lea.hbm %s918_s3, %s429_s25  ;;  %s866_s10 = int_to_ptr.vmem [resolvable:$true] %s313_s10 }
  0x60   : > { %v255_v7 = vsel %vm246_vm0, %v253_v3, 0.0  ;;  %v262_v8 = vsel %vm246_vm0, %v261_v4, 0.0  ;;  %v247_v10 = vsel %vm246_vm0, %v244_v6, 0.0  ;;  %s297_s26 = scalar_lea.sflag [#allocation5], %s846_s22  ;;  %s574_s17 = scalar_lea.vmem %s866_s10, 32 }
  0x61   : > { %256 = vadd.xlane.f32.xlu0 %v255_v7  ;;  %263 = vadd.xlane.f32.xlu1 %v262_v8  ;;  %v258_v9 = vsel %vm246_vm0, %v254_v5, 0.0  ;;  %v250_v12 = vsel %vm246_vm0, %v245_v11, 0.0  ;;  %v285_v28 = vsub.s32 %v282_v21, %v284_v22  ;;  %p575_p13 = scmp.ne.s32.totalorder %s866_s10, %s574_s17  ;;  %s666_s4 = smov [#allocation8]  }
  0x62   : > { %s578_s27 = sshll.u32 %s666_s4, 4  ;;  %s579_s27 = int_to_ptr.vmem [resolvable:$false] %s578_s27 }
  0x63   : > { %v276_v26 = vstv %s275_s21  ;;  %p576_p6 = pnand %p575_p13, %p789_p10  ;;  %s580_s6 = scalar_lea.vmem %s579_s27, 64 }
  0x64   : > { %p581_p12 = scmp.lt.s32.totalorder %s866_s10, %s579_s27  ;;  %p582_p11 = scmp.lt.s32.totalorder %s580_s6, %s574_s17 }
  0x65   : > { %259 = vadd.xlane.f32.xlu0 %v258_v9  ;;  %248 = vadd.xlane.f32.xlu1 %v247_v10  ;;  %p577_p8 = pneg %p576_p6 }
  0x66   : > { %p583_p0 = por %p582_p11, %p581_p12 }
  0x68   : > { %p584_p5 = pnand %p583_p0, %p577_p8 }
  0x69   : > { %251 = vadd.xlane.f32.xlu0 %v250_v12 }
  0xee   : > { %v257_v13 = vpop.xlane.xlu0 %256  ;;  %v264_v14 = vpop.xlane.xlu1 %263 }
  0xef   : > { %v265_v15 = vmax.f32 %v257_v13, 1e-16  ;;  %v271_v16 = vmax.f32 %v264_v14, 1e-16 }
  0xf1   : > { %510 = vrsqrt.f32 %v265_v15 }
  0xf2   : > { %512 = vrsqrt.f32 %v271_v16  ;;  %v260_v17 = vpop.xlane.xlu0 %259  ;;  %v249_v20 = vpop.xlane.xlu1 %248 }
  0xf3   : > { %v266_v18 = vmax.f32 %v260_v17, 1e-16 }
  0xf5   : > { %514 = vrsqrt.f32 %v266_v18 }
  0xf6   : > { %v252_v27 = vpop.xlane.xlu0 %251 }
  0xfb   : > { %v511_v23 = vpop.eup %510 }
  0xfc   : > { %v513_v24 = vpop.eup %512  ;;  %v269_v25 = vmul.f32 %v511_v23, %v249_v20 }
  0xfe   : > { %v273_v29 = vmul.f32 %v513_v24, %v269_v25 }
  0xff   : > { %v515_v30 = vpop.eup %514 }
 0x100   : > { %v277_v31 = vmul.f32 %v276_v26, %v273_v29  ;;  %v270_v32 = vmul.f32 %v515_v30, %v252_v27 }
 0x102   : > { %v286_v33 = vrot.slane %v277_v31, %v285_v28  ;;  %v274_v34 = vmul.f32 %v513_v24, %v270_v32 }
 0x104   : > { %294 = vst.msk [vmem:[%s238_s9] sm:$0x1] %vm293_vm1, %v286_v33  ;;  %v278_v35 = vmul.f32 %v276_v26, %v274_v34 }
 0x106   : > { %v290_v36 = vrot.slane %v278_v35, %v285_v28 }
 0x108   : > { %295 = vst.msk [vmem:[%s238_s9 + $0x1] sm:$0x1] %vm293_vm1, %v290_v36 }
 0x109   : > { %587 = shalt.err (!%p584_p5)
}
 0x10a   : > { %s588_s7 = scalar_lea.hbm %s864_s28, 32  ;;  %s592_s11 = scalar_lea.hbm %s918_s3, 64 }
 0x10b   : > { %p589_p9 = scmp.ne.s32.totalorder %s864_s28, %s588_s7  ;;  %p593_p7 = scmp.lt.u32.totalorder %s864_s28, %s918_s3 }
 0x10c   : > { %p594_p3 = scmp.lt.u32.totalorder %s592_s11, %s588_s7  ;;  %p596_p13 = scmp.lt.u32.totalorder %s588_s7, %s864_s28 }
 0x10d   : > { %p590_p1 = pnand %p589_p9, %p789_p10 }
 0x10e   : > { %p595_p4 = por %p594_p3, %p593_p7 }
 0x10f   : > { %p591_p2 = pneg %p590_p1 }
 0x110   : > { %p597_p6 = por %p596_p13, %p595_p4 }
 0x112   : > { %p598_p8 = pnand %p597_p6, %p591_p2 }
 0x114   : > { %601 = shalt.err (!%p598_p8)
}
 0x115   : > { %s667_s23 = smov 16   ;;  %s668_s25 = smov 32  }
 0x116   : > { %s669_s9 = smov 1  }
 0x117   : > { %438 = dma.vmem_to_hbm [thread:$0]  (%p789_p10), %s866_s10, 32, %s864_s28, %s297_s26, %s667_s23, %s668_s25, %s669_s9  }
 0x118 PF: > { %s328_s12 = sand.u32 1, %s640_s14   ;;  %p936_p12 = scmp.ne.s32.totalorder %s926_s24, 0 }
 0x119   : > { %p937_p11 = scmp.ge.s32.totalorder %s660_s19, 2  ;;  %s329_s20 = scalar_lea.sflag [#allocation5], %s328_s12 }
 0x11b   : > { %p449_p0 = pnand %p937_p11, %p936_p12 }
 0x11d   : > { %635 = dma.done.wait (!%p449_p0), %s329_s20, 32  }
 0x11e   : > { %637 = vsyncadd (!%p449_p0), %s329_s20, 4294967264  ;;  %s21_s19 = sadd.s32 1, %s660_s19   ;;  %s938_s14 = smov %s644_s15 }
 0x11f   : > { %p18_p5 = scmp.ge.s32.totalorder %s21_s19, 4   ;;  %s939_s15 = smov %s648_s16 }
 0x120   : > { %s940_s16 = smov %s798_s5  ;;  %s941_s17 = smov %s656_s18 }
 0x121   : > { %s942_s18 = smov %s944_s29  ;;  %20 = sbr.rel (!%p18_p5) target bundleno = 9 (0x9), region = 83 }
 0x128   :  { %334 = vsyncpa [#allocation4], 1 }
 0x129   :  { %336 = vsyncpa [#allocation4 + $0x1], 1 }
 0x12a   :  { %337 = vsyncpa [#allocation7], 1 }
 0x12b   :  { %339 = vsyncpa [#allocation7 + $0x1], 1 }
 0x12c   :  { %340 = vsyncpa [#allocation5], 1 }
 0x12d   :  { %342 = vsyncpa [#allocation5 + $0x1], 1 }

</bundles_post_ra>
